<compile_context>
chip_gen: v7x
topology: tpu7x:2x2x1
jax: 0.10.0
libtpu: 0.0.40
codegen_flags: <defaults>
</compile_context>

<pallas_src>
import math

import jax
import jax.numpy as jnp
from jax.experimental import pallas as pl
from jax.experimental.pallas import tpu as pltpu


def _round_up(x, m):
    return ((x + m - 1) // m) * m


def _cdiv(a, b):
    return (a + b - 1) // b


def _divisors(n):
    small, large = [], []
    i = 1
    while i * i <= n:
        if n % i == 0:
            small.append(i)
            if i != n // i:
                large.append(n // i)
        i += 1
    return small + large[::-1]


def _vmem_capacity_bytes():
    """Physical per-core VMEM (generation-aware); conservative fallback."""
    try:
        info = pltpu.get_tpu_info()
        cap = getattr(info, "vmem_capacity_bytes", None)
        if cap:
            return int(cap)
    except Exception:
        pass
    return 64 * 1024 * 1024  # v7x-sized (smallest current generation)


def _choose_layout(N, C, itemsize, block_budget):
    """Factor the per-batch flat row N*C into (R, cols) = (N // g, C * g).

    Requirements / goals:
      * cols % C == 0  -> every row (and every block) starts on a point
        boundary, so the per-batch translation pattern tiles cleanly.
      * Score by padded (8, 128)-tile occupancy:
          lane_eff    = cols / round_up(cols, 128)
          sublane_eff = min(R, 8) / 8
        so layouts that waste vreg/VMEM space on padding lose.
      * Only accept factorizations whose minimal 8-row block fits the
        per-buffer VMEM budget (g = 1 always fits, so a choice always exists).
    """
    best_key, best = None, None
    for g in _divisors(N):
        cols = C * g
        R = N // g
        cols_pad = _round_up(cols, 128)
        fits = 8 * cols_pad * itemsize <= block_budget
        lane_eff = cols / cols_pad
        sublane_eff = min(R, 8) / 8.0
        key = (fits, lane_eff * sublane_eff, cols)
        if best_key is None or key > best_key:
            best_key, best = key, (g, R, cols)
    return best


def _translate_kernel(pts_ref, trans_ref, out_ref):
    # pts_ref / out_ref: (1, rows_per_block, cols) VMEM tiles (lane-dense).
    # trans_ref:         (1, 1, cols) per-batch translation row.
    # Pure element-wise add; the translation row is broadcast along sublanes
    # (standard bias-add pattern on the VPU). Partial last row blocks are
    # handled by Pallas' masked writeback, which is safe for elementwise ops.
    out_ref[...] = pts_ref[...] + trans_ref[...]


def point_cloud_translation(points, key, translate_range=0.2):
    """points: (B, N, C) float array with C >= 3. Returns translated points."""
    B, N, C = points.shape
    assert C >= 3, "point cloud must carry at least xyz channels"
    dtype = points.dtype
    itemsize = jnp.dtype(dtype).itemsize

    # torch.rand(B, 3) * 2r - r == Uniform[-r, r). Draw in float32, then cast,
    # so low-precision point dtypes do not coarsen the sampling.
    # (JAX RNG stream necessarily differs from torch's; fine for augmentation.)
    translation = (
        jax.random.uniform(key, (B, 3), dtype=jnp.float32) * (2.0 * translate_range)
        - translate_range
    ).astype(dtype)
    trans_padded = jnp.pad(translation, ((0, 0), (0, C - 3)))  # (B, C): xyz only

    # ---- generation-aware block sizing -------------------------------------
    vmem_cap = _vmem_capacity_bytes()
    # ~4 MiB of padded real data per streamed buffer (clamped), so the whole
    # pipeline (in x2 + out x2 + trans x2) stays well inside every
    # generation's VMEM even after padding; we also set the limit explicitly.
    block_budget = min(max(vmem_cap // 16, 1 << 20), 4 << 20)

    g, R, cols = _choose_layout(N, C, itemsize, block_budget)
    cols_pad = _round_up(cols, 128)

    # Rows per block: multiple of 8 (full sublanes), as large as the budget
    # allows, never larger than R (the partial last block is masked).
    if R <= 8:
        rows_per_block = R
    else:
        max_rows = max(8, (block_budget // (cols_pad * itemsize)) // 8 * 8)
        rows_per_block = max(8, min((R // 8) * 8, max_rows))
    n_row_blocks = _cdiv(R, rows_per_block)
    # v7x has 2 TensorCores: make sure the parallel grid has >= 2 steps when
    # there is enough data to split.
    if B * n_row_blocks < 2 and R >= 16:
        rows_per_block = max(8, (R // 2) // 8 * 8)
        n_row_blocks = _cdiv(R, rows_per_block)

    # ---- explicit VMEM budget: padded, double-buffered, all operands -------
    block_bytes = _round_up(rows_per_block, 8) * cols_pad * itemsize
    trans_bytes = 8 * cols_pad * itemsize
    footprint = 4 * block_bytes + 2 * trans_bytes  # in(x2) + out(x2) + trans(x2)
    vmem_limit = int(min(max(2 * footprint, 16 << 20), (vmem_cap * 3) // 4))

    # ---- lane-dense operands ------------------------------------------------
    pts3 = points.reshape(B, R, cols)
    # Per-batch translation tiled across one row of points: tiny, VMEM-resident
    # per batch, broadcast along sublanes inside the kernel.
    trans_slab = jnp.tile(trans_padded, (1, g)).reshape(B, 1, cols)

    out3 = pl.pallas_call(
        _translate_kernel,
        out_shape=jax.ShapeDtypeStruct((B, R, cols), dtype),
        grid_spec=pltpu.PrefetchScalarGridSpec(
            num_scalar_prefetch=0,
            grid=(B, n_row_blocks),
            in_specs=[
                pl.BlockSpec((1, rows_per_block, cols), lambda b, r: (b, r, 0)),
                pl.BlockSpec((1, 1, cols), lambda b, r: (b, 0, 0)),
            ],
            out_specs=pl.BlockSpec((1, rows_per_block, cols), lambda b, r: (b, r, 0)),
        ),
        compiler_params=pltpu.CompilerParams(
            dimension_semantics=("parallel", "parallel"),
            vmem_limit_bytes=vmem_limit,
        ),
        # NOTE: no input_output_aliases -- unless the caller actually donates
        # `points` (jit donate_argnums) aliasing just makes XLA insert a
        # defensive full-size copy in front of this memory-bound kernel.
        # TODO(synk): callers that want the PyTorch in-place contract should
        # donate `points` at their jit boundary.
    )(pts3, trans_slab)

    return out3.reshape(B, N, C)


if __name__ == "__main__":
    key = jax.random.PRNGKey(0)
    k_pts, k_trans = jax.random.split(key)

    B, N, C = 2, 128, 6  # small point cloud: xyz + 3 extra feature channels
    points = jax.random.normal(k_pts, (B, N, C), dtype=jnp.float32)

    out = point_cloud_translation(points, k_trans, translate_range=0.2)
    out = jax.block_until_ready(out)

    # Pure-JAX reference (same RNG draw as the wrapper).
    translation = (
        jax.random.uniform(k_trans, (B, 3), dtype=jnp.float32) * (2.0 * 0.2) - 0.2
    ).astype(points.dtype)
    ref = points.at[:, :, :3].add(translation[:, None, :])
    assert out.shape == points.shape
    assert jnp.allclose(out, ref, atol=1e-6), "mismatch vs reference"

    print("KERNEL_OK")
</pallas_src>

<mosaic_0001>
module attributes {stable_mosaic.version = 11 : i64} {
  func.func @_translate_kernel(%arg0: i32, %arg1: i32, %arg2: memref<1x8x96xf32, #tpu.memory_space<vmem>>, %arg3: memref<1x1x96xf32, #tpu.memory_space<vmem>>, %arg4: memref<1x8x96xf32, #tpu.memory_space<vmem>>) attributes {dimension_semantics = [#tpu.dimension_semantics<parallel>, #tpu.dimension_semantics<parallel>], iteration_bounds = array<i64: 2, 1>, scalar_prefetch = 0 : i64, scratch_operands = 0 : i64, tpu.core_type = #tpu.core_type<tc>, window_params = [{transform_indices = @transform_0, window_bounds = array<i64: 1, 8, 96>}, {transform_indices = @transform_1, window_bounds = array<i64: 1, 1, 96>}, {transform_indices = @transform_2, window_bounds = array<i64: 1, 8, 96>}]} {
    %c0 = arith.constant 0 : index
    %c0_0 = arith.constant 0 : index
    %c0_1 = arith.constant 0 : index
    %0 = vector.load %arg2[%c0, %c0_0, %c0_1] : memref<1x8x96xf32, #tpu.memory_space<vmem>>, vector<1x8x96xf32>
    %c0_2 = arith.constant 0 : index
    %c0_3 = arith.constant 0 : index
    %c0_4 = arith.constant 0 : index
    %1 = vector.load %arg3[%c0_2, %c0_3, %c0_4] : memref<1x1x96xf32, #tpu.memory_space<vmem>>, vector<1x1x96xf32>
    %2 = vector.broadcast %1 : vector<1x1x96xf32> to vector<1x8x96xf32>
    %3 = arith.addf %0, %2 : vector<1x8x96xf32>
    %c0_5 = arith.constant 0 : index
    %c0_6 = arith.constant 0 : index
    %c0_7 = arith.constant 0 : index
    %4 = vector.load %arg4[%c0_5, %c0_6, %c0_7] : memref<1x8x96xf32, #tpu.memory_space<vmem>>, vector<1x8x96xf32>
    tpu.vector_store %arg4[%c0_5, %c0_6, %c0_7], %3 {strides = array<i32>} : memref<1x8x96xf32, #tpu.memory_space<vmem>>, vector<1x8x96xf32>,
    return
  }
  func.func @transform_0(%arg0: i32, %arg1: i32) -> (i32, i32, i32) {
    %c0_i32 = arith.constant 0 : i32
    %c0_i32_0 = arith.constant 0 : i32
    return %arg0, %arg1, %c0_i32 : i32, i32, i32
  }
  func.func @transform_1(%arg0: i32, %arg1: i32) -> (i32, i32, i32) {
    %c0_i32 = arith.constant 0 : i32
    %c0_i32_0 = arith.constant 0 : i32
    %c0_i32_1 = arith.constant 0 : i32
    return %arg0, %c0_i32, %c0_i32_0 : i32, i32, i32
  }
  func.func @transform_2(%arg0: i32, %arg1: i32) -> (i32, i32, i32) {
    %c0_i32 = arith.constant 0 : i32
    %c0_i32_0 = arith.constant 0 : i32
    return %arg0, %arg1, %c0_i32 : i32, i32, i32
  }
}

</mosaic_0001>

<bundles_post_ra>
// kernel: tpu_custom_call.1
= control target key start
LH: loop header
LB: loop body
LE: loop exit
PB: predicated region body
PF: predicated region fallthrough
CT: control target
= control target key end

     0   :  { %7 = vsyncpa [#allocation3], 0  ;;  %s689_s0 = inlined_call_operand.hbm [shape: f32[2,8,96], index: 0, kind: input, shape index: {}]   ;;  %s690_s1 = inlined_call_operand.vmem [shape: f32[2,1,96], index: 1, kind: input, shape index: {}]   ;;  %s691_s2 = inlined_call_operand.hbm [shape: f32[2,8,96], index: 2, kind: output, shape index: {}]  }
   0x1   :  { %9 = vsyncpa [#allocation3 + $0x1], 0 }
   0x2   :  { %10 = vsyncpa [#allocation4], 0 }
   0x3   :  { %12 = vsyncpa [#allocation4 + $0x1], 0  ;;  %s512_s9 = smov 0   ;;  %s514_s10 = smov 0  }
   0x4   :  { %s516_s11 = smov 0   ;;  %s518_s12 = smov 0  }
   0x5   :  { %s520_s13 = smov 0   ;;  %s522_s14 = smov 0  }
   0x6 LB: > { %s305_s15 = sadd.s32 4294967295, %s493_s14   ;;  %s306_s16 = sadd.s32 4294967294, %s493_s14   ;;  %s493_s14 = sphi %s522_s14, %s18_s14   ;;  %s489_s13 = sphi %s520_s13, %s707_s13   ;;  %s485_s12 = sphi %s518_s12, %s706_s12   ;;  %s481_s11 = sphi %s516_s11, %s705_s11   ;;  %s477_s10 = sphi %s514_s10, %s704_s10   ;;  %s473_s9 = sphi %s512_s9, %s703_s9  }
   0x7   : > { %s30_s17 = sadd.s32 1, %s489_s13  ;;  %s39_s18 = sadd.s32 1, %s481_s11 }
   0x8   : > { %p32_p0 = scmp.ge.s32.totalorder %s30_s17, 2  ;;  %p46_p1 = scmp.ne.s32.totalorder %s481_s11, %s477_s10 }
   0x9   : > { %p47_p2 = scmp.eq.s32.totalorder %s493_s14, 0  ;;  %p52_p3 = scmp.ne.s32.totalorder %s477_s10, %s473_s9 }
   0xa   : > { %s709_s17 = smov (%p32_p0, %s30_s17), 0  ;;  %p53_p5 = scmp.eq.s32.totalorder %s305_s15, 0 }
   0xb   : > { %p553_p4 = por %p47_p2, %p46_p1  ;;  %s34_s20 = ssub.s32 %s489_s13, %s709_s17 }
   0xc   : > { %p104_p6 = scmp.eq.s32.totalorder %s305_s15, 1  ;;  %p37_p7 = scmp.eq.s32.totalorder %s34_s20, 0 }
   0xd   : > { %p559_p8 = por %p53_p5, %p52_p3  ;;  %p110_p10 = scmp.eq.s32.totalorder %s306_s16, 1 }
   0xe   : > { %p563_p9 = por %p104_p6, %p46_p1  ;;  %p331_p13 = scmp.lt.s32.totalorder %s493_s14, 2 }
   0xf   : > { %s568_s23 = scalar_select %p37_p7, %s481_s11, %s39_s18  }
  0x10   : > { %s695_s22 = scalar_select %p563_p9, 1, 0 }
  0x11   : > { %p570_p11 = por %p110_p10, %p52_p3  ;;  %s130_s25 = sand.u32 1, %s481_s11  }
  0x12   : > { %s309_s26 = sshll.u32 %s130_s25, 3  ;;  %s310_s27 = sshll.u32 %s489_s13, 7 }
  0x13   : > { %s696_s24 = scalar_select %p570_p11, 1, 0 }
  0x14   : > { %s581_s30 = scalar_lea.hbm %s689_s0, %s310_s27  ;;  %s134_s3 = scalar_lea.vmem [#allocation2], %s309_s26 }
  0x15   : > { %s142_s4 = sshll.u32 %s134_s3, 4  ;;  %p587_p0 = pnand %p331_p13, %p553_p4  ;;  %s583_s4 = int_to_ptr.vmem [resolvable:$true] %s142_s4 }
  0x16   : > { %s131_s6 = scalar_lea.sflag [#allocation3], %s130_s25  ;;  %s381_s7 = scalar_lea.hbm %s581_s30, 128 }
  0x17   : > { %p382_p3 = scmp.ne.s32.totalorder %s581_s30, %s381_s7  ;;  %p383_p5 = pneg %p587_p0 }
  0x18   : > { %s386_s16 = scalar_lea.hbm %s689_s0, 256  ;;  %p387_p4 = scmp.lt.u32.totalorder %s581_s30, %s689_s0 }
  0x19   : > { %p384_p6 = pnand %p383_p5, %p382_p3  ;;  %p388_p10 = scmp.lt.u32.totalorder %s386_s16, %s381_s7 }
  0x1a   : > { %p390_p12 = scmp.lt.u32.totalorder %s381_s7, %s581_s30 }
  0x1b   : > { %p385_p7 = pneg %p384_p6  ;;  %p389_p13 = por %p388_p10, %p387_p4 }
  0x1d   : > { %p391_p1 = por %p390_p12, %p389_p13 }
  0x1f   : > { %p392_p2 = pnand %p391_p1, %p385_p7 }
  0x21   : > { %395 = shalt.err (!%p392_p2)
}
  0x22   : > { %s396_s20 = scalar_lea.vmem %s583_s4, 128  ;;  %s495_s25 = smov [#allocation2]  }
  0x23   : > { %p397_p3 = scmp.ne.s32.totalorder %s583_s4, %s396_s20  ;;  %s401_s26 = sshll.u32 %s495_s25, 4  ;;  %s402_s26 = int_to_ptr.vmem [resolvable:$false] %s401_s26 }
  0x24   : > { %s403_s27 = scalar_lea.vmem %s402_s26, 256  ;;  %p404_p9 = scmp.lt.s32.totalorder %s583_s4, %s402_s26 }
  0x25   : > { %p399_p6 = pnand %p397_p3, %p383_p5  ;;  %p405_p4 = scmp.lt.s32.totalorder %s403_s27, %s396_s20 }
  0x27   : > { %p400_p11 = pneg %p399_p6  ;;  %p406_p10 = por %p405_p4, %p404_p9 }
  0x29   : > { %p407_p12 = pnand %p406_p10, %p400_p11 }
  0x2b   : > { %410 = shalt.err (!%p407_p12)
}
  0x2c   : > { %326 = dma.hbm_to_vmem [thread:$0]  (!%p587_p0), %s581_s30, 128, %s583_s4, %s131_s6  }
  0x2d   : > { %p698_p1 = scmp.lt.s32.totalorder %s493_s14, 3  ;;  %p699_p2 = scmp.ge.s32.totalorder %s493_s14, 1 }
  0x2f   : > { %p154_p5 = pnand %p699_p2, %p698_p1 }
  0x30   : > { %s623_s28 = sand.u32 (!%p154_p5), 1, %s477_s10  }
  0x31   : > { %157 = sbr.rel (%p154_p5) target bundleno = 85 (0x55), region = 28  ;;  %s312_s29 = sshll.u32 (!%p154_p5), %s623_s28, 3 }
  0x32   : > { %s160_s3 = scalar_lea.sflag (!%p154_p5), [#allocation3], %s623_s28  ;;  %s163_s7 = scalar_lea.vmem (!%p154_p5), [#allocation2], %s312_s29 }
  0x38   : > { %464 = dma.done.wait (%p559_p8), %s160_s3, 128  }
  0x39   : > { %466 = vsyncadd (%p559_p8), %s160_s3, 4294967168  ;;  %p187_p9 = scmp.lt.s32.totalorder %s485_s12, 1  ;;  %s186_s8 = scalar_lea.vmem [#allocation5], %s312_s29  ;;  %v190_v0 = vld [vmem:[%s163_s7] sm:$0xff]  ;;  %vm199_vm0 = vcmask 785408  }
  0x3a   : > { %s216_s15 = sshll.u32 %s186_s8, 4  ;;  %s316_s16 = sshll.u32 %s485_s12, 7  ;;  %s637_s15 = int_to_ptr.vmem [resolvable:$true] %s216_s15 }
  0x3b   : > { %s188_s30 = scalar_select %p187_p9, %s485_s12, 1 }
  0x3c   : > { %s642_s19 = scalar_lea.hbm %s691_s2, %s316_s16  ;;  %s202_s20 = scalar_lea.sflag [#allocation4], %s623_s28 }
  0x3d   : > { %s189_s6 = scalar_lea.vmem %s690_s1, %s188_s30  ;;  %s411_s25 = scalar_lea.vmem %s637_s15, 128 }
  0x3e   : > { %v314_v1 = vld [vmem:[%s189_s6] ss:$0 sm:$0xff]  ;;  %p412_p8 = scmp.ne.s32.totalorder %s637_s15, %s411_s25  ;;  %p700_p11 = scmp.ne.s32.totalorder %s695_s22, 0 }
  0x3f   : > { %v198_v2 = vadd.f32 %v314_v1, %v190_v0  ;;  %s496_s12 = smov [#allocation5]  }
  0x40   : > { %p413_p0 = pnand %p412_p8, %p700_p11  ;;  %s415_s26 = sshll.u32 %s496_s12, 4  ;;  %s416_s26 = int_to_ptr.vmem [resolvable:$false] %s415_s26 }
  0x41   : > { %200 = vst.msk [vmem:[%s186_s8] sm:$0xff] %vm199_vm0, %v198_v2  ;;  %s417_s27 = scalar_lea.vmem %s416_s26, 256  ;;  %p418_p13 = scmp.lt.s32.totalorder %s637_s15, %s416_s26 }
  0x42   : > { %p414_p7 = pneg %p413_p0  ;;  %p419_p3 = scmp.lt.s32.totalorder %s417_s27, %s411_s25 }
  0x44   : > { %p420_p6 = por %p419_p3, %p418_p13 }
  0x46   : > { %p421_p4 = pnand %p420_p6, %p414_p7 }
  0x48   : > { %424 = shalt.err (!%p421_p4)
}
  0x49   : > { %s425_s28 = scalar_lea.hbm %s642_s19, 128  ;;  %s429_s7 = scalar_lea.hbm %s691_s2, 256 }
  0x4a   : > { %p426_p10 = scmp.ne.s32.totalorder %s642_s19, %s425_s28  ;;  %p430_p2 = scmp.lt.u32.totalorder %s642_s19, %s691_s2 }
  0x4b   : > { %p431_p5 = scmp.lt.u32.totalorder %s429_s7, %s425_s28  ;;  %p433_p8 = scmp.lt.u32.totalorder %s425_s28, %s642_s19 }
  0x4c   : > { %p427_p12 = pnand %p426_p10, %p700_p11 }
  0x4d   : > { %p432_p9 = por %p431_p5, %p430_p2 }
  0x4e   : > { %p428_p1 = pneg %p427_p12 }
  0x4f   : > { %p434_p0 = por %p433_p8, %p432_p9 }
  0x51   : > { %p435_p7 = pnand %p434_p0, %p428_p1 }
  0x53   : > { %438 = shalt.err (!%p435_p7)
}
  0x54   : > { %321 = dma.vmem_to_hbm [thread:$0]  (%p700_p11), %s637_s15, 128, %s642_s19, %s202_s20  }
  0x55 PF: > { %s228_s5 = sand.u32 1, %s473_s9   ;;  %p701_p13 = scmp.ne.s32.totalorder %s696_s24, 0 }
  0x56   : > { %p702_p3 = scmp.ge.s32.totalorder %s493_s14, 2  ;;  %s229_s6 = scalar_lea.sflag [#allocation4], %s228_s5 }
  0x58   : > { %p328_p6 = pnand %p702_p3, %p701_p13 }
  0x5a   : > { %468 = dma.done.wait (!%p328_p6), %s229_s6, 128  }
  0x5b   : > { %470 = vsyncadd (!%p328_p6), %s229_s6, 4294967168  ;;  %s18_s14 = sadd.s32 1, %s493_s14   ;;  %s703_s9 = smov %s477_s10 }
  0x5c   : > { %p15_p4 = scmp.ge.s32.totalorder %s18_s14, 4   ;;  %s704_s10 = smov %s481_s11 }
  0x5d   : > { %s705_s11 = smov %s568_s23  ;;  %s706_s12 = smov %s489_s13 }
  0x5e   : > { %s707_s13 = smov %s709_s17  ;;  %17 = sbr.rel (!%p15_p4) target bundleno = 6 (0x6), region = 76 }
  0x65   :  { %234 = vsyncpa [#allocation3], 1 }
  0x66   :  { %236 = vsyncpa [#allocation3 + $0x1], 1 }
  0x67   :  { %237 = vsyncpa [#allocation4], 1 }
  0x68   :  { %239 = vsyncpa [#allocation4 + $0x1], 1 }

</bundles_post_ra>
